<compile_context>
chip_gen: v7x
topology: tpu7x:2x2x1
jax: 0.10.0
libtpu: 0.0.40
codegen_flags: <defaults>
</compile_context>

<pallas_src>
import jax
import jax.numpy as jnp
from jax.experimental import pallas as pl
from jax.experimental.pallas import tpu as pltpu


def _round_up(a, b):
    return ((a + b - 1) // b) * b


def _make_kernel(n_valid, block_n, eps):
    def kernel(xt_ref, yt_ref, o_ref):
        i = pl.program_id(0)
        # (C, TN): classes on sublanes, batch elements on the 128-lane axis.
        x = xt_ref[...].astype(jnp.float32)
        y = yt_ref[...].astype(jnp.float32)

        # concat-free softmax over the 2C concatenated logits of each column:
        # shared max and shared denominator across x and y.
        m = jnp.maximum(jnp.max(x, axis=0, keepdims=True),
                        jnp.max(y, axis=0, keepdims=True))             # (1, TN)
        ex = jnp.exp(x - m)
        ey = jnp.exp(y - m)
        s = ex + ey                                                    # (C, TN)
        d = jnp.sum(s, axis=0, keepdims=True)                          # (1, TN)

        # entropy rewrite: p = s / D  =>  -sum_c p*log(p + eps)
        #   = log(D) - (1/D) * sum_c s * log(s + eps)
        # (eps stays inside the log so underflowed classes contribute exactly 0)
        s_log_s = jnp.sum(s * jnp.log(s + eps), axis=0, keepdims=True)  # (1, TN)
        inv_d = pl.reciprocal(d, approx=True)        # EUP slot, one per column
        inv_d = inv_d * (2.0 - d * inv_d)            # one Newton step -> f32 accuracy
        ent = jnp.log(d) - s_log_s * inv_d                             # (1, TN)

        # mask padded batch columns of the last (partial) block.
        col = i * block_n + jax.lax.broadcasted_iota(jnp.int32, ent.shape, 1)
        o_ref[...] = jnp.where(col < n_valid, ent, 0.0)

    return kernel


def symnets_entropy_loss(x, y, *, block_n=None):
    """loss = mean_n(-sum_c p*log(p+tiny)), p = sum of the two concat-softmax halves."""
    assert x.shape == y.shape and x.ndim == 2
    n, c = x.shape
    itemsize = jnp.dtype(x.dtype).itemsize

    # Lane-dense layout (critical for C < 128): batch -> lanes, classes -> sublanes.
    # Pure layout plumbing in the wrapper; for C >= 128 a (TN, C) row-major variant
    # would skip this transpose with the same kernel math.
    xt = x.T   # (C, N)
    yt = y.T

    if block_n is None:
        # Largest lane tile whose double-buffered inputs + in-kernel f32
        # temporaries stay well inside the scoped-VMEM budget on every
        # generation (v7x has only 64 MiB physical / 32 MiB scoped per core).
        pipeline_budget = 8 * 1024 * 1024
        bytes_per_col = 2 * 2 * c * itemsize + 8 * c * 4
        block_n = (pipeline_budget // bytes_per_col) // 128 * 128
        block_n = max(128, min(block_n, 2048))
    assert block_n % 128 == 0
    block_n = min(block_n, _round_up(n, 128))
    num_blocks = pl.cdiv(n, block_n)

    eps = float(jnp.finfo(jnp.float32).tiny)
    kernel = _make_kernel(n, block_n, eps)

    cost = pl.CostEstimate(
        flops=8 * n * c,
        transcendentals=3 * n * c + 3 * n,   # 2 exp + 1 log per elem, per-col log/rcp
        bytes_accessed=2 * n * c * itemsize + num_blocks * block_n * 4,
    )

    partial = pl.pallas_call(
        kernel,
        out_shape=jax.ShapeDtypeStruct((1, num_blocks * block_n), jnp.float32),
        grid_spec=pltpu.PrefetchScalarGridSpec(
            num_scalar_prefetch=0,
            grid=(num_blocks,),
            in_specs=[
                pl.BlockSpec((c, block_n), lambda i: (0, i)),
                pl.BlockSpec((c, block_n), lambda i: (0, i)),
            ],
            out_specs=pl.BlockSpec((1, block_n), lambda i: (0, i)),
        ),
        compiler_params=pltpu.CompilerParams(
            dimension_semantics=("parallel",),
            vmem_limit_bytes=32 * 1024 * 1024,
        ),
        cost_estimate=cost,
    )(xt, yt)

    # Tiny final reduction (num_blocks * block_n floats) + mean in plain XLA.
    return jnp.sum(partial) / n


def _reference(x, y):
    x = x.astype(jnp.float32)
    y = y.astype(jnp.float32)
    z = jax.nn.softmax(jnp.concatenate([x, y], axis=1), axis=1)
    c = x.shape[1]
    p = z[:, :c] + z[:, c:]
    eps = jnp.finfo(jnp.float32).tiny
    return jnp.mean(-jnp.sum(p * jnp.log(p + eps), axis=1))


if __name__ == "__main__":
    key = jax.random.PRNGKey(0)
    kx, ky = jax.random.split(key)
    # batch=300 (NOT a multiple of the 128-wide tile -> exercises the grid and
    # the padded-column masking), num_classes=16 (the small-C / lane-dense case).
    N, C = 300, 16
    x = jax.random.normal(kx, (N, C), dtype=jnp.float32)
    y = jax.random.normal(ky, (N, C), dtype=jnp.float32)

    loss = jax.block_until_ready(symnets_entropy_loss(x, y, block_n=128))
    ref = jax.block_until_ready(_reference(x, y))
    assert jnp.allclose(loss, ref, atol=1e-4, rtol=1e-4), (loss, ref)

    # bf16 logits straight from HBM (half the bytes moved); kernel upcasts to f32.
    xb, yb = x.astype(jnp.bfloat16), y.astype(jnp.bfloat16)
    loss_bf16 = jax.block_until_ready(symnets_entropy_loss(xb, yb, block_n=128))
    ref_bf16 = jax.block_until_ready(_reference(xb, yb))
    assert jnp.allclose(loss_bf16, ref_bf16, atol=1e-4, rtol=1e-4), (loss_bf16, ref_bf16)

    print("KERNEL_OK")
</pallas_src>

<mosaic_0001>
module attributes {stable_mosaic.version = 11 : i64} {
  func.func @kernel(%arg0: i32, %arg1: memref<16x128xf32, #tpu.memory_space<vmem>>, %arg2: memref<16x128xf32, #tpu.memory_space<vmem>>, %arg3: memref<1x128xf32, #tpu.memory_space<vmem>>) attributes {dimension_semantics = [#tpu.dimension_semantics<parallel>], iteration_bounds = array<i64: 3>, scalar_prefetch = 0 : i64, scratch_operands = 0 : i64, tpu.core_type = #tpu.core_type<tc>, window_params = [{transform_indices = @transform_0, window_bounds = array<i64: 16, 128>}, {transform_indices = @transform_1, window_bounds = array<i64: 16, 128>}, {transform_indices = @transform_2, window_bounds = array<i64: 1, 128>}]} {
    %c0 = arith.constant 0 : index
    %c0_0 = arith.constant 0 : index
    %0 = vector.load %arg1[%c0, %c0_0] : memref<16x128xf32, #tpu.memory_space<vmem>>, vector<16x128xf32>
    %c0_1 = arith.constant 0 : index
    %c0_2 = arith.constant 0 : index
    %1 = vector.load %arg2[%c0_1, %c0_2] : memref<16x128xf32, #tpu.memory_space<vmem>>, vector<16x128xf32>
    %cst = arith.constant dense<0xFF800000> : vector<128xf32>
    %2 = vector.multi_reduction <maximumf>, %0, %cst [0] : vector<16x128xf32> to vector<128xf32>
    %3 = vector.shape_cast %2 : vector<128xf32> to vector<1x128xf32>
    %cst_3 = arith.constant dense<0xFF800000> : vector<128xf32>
    %4 = vector.multi_reduction <maximumf>, %1, %cst_3 [0] : vector<16x128xf32> to vector<128xf32>
    %5 = vector.shape_cast %4 : vector<128xf32> to vector<1x128xf32>
    %6 = arith.maximumf %3, %5 : vector<1x128xf32>
    %7 = vector.broadcast %6 : vector<1x128xf32> to vector<16x128xf32>
    %8 = arith.subf %0, %7 : vector<16x128xf32>
    %9 = math.exp %8 : vector<16x128xf32>
    %10 = vector.broadcast %6 : vector<1x128xf32> to vector<16x128xf32>
    %11 = arith.subf %1, %10 : vector<16x128xf32>
    %12 = math.exp %11 : vector<16x128xf32>
    %13 = arith.addf %9, %12 : vector<16x128xf32>
    %cst_4 = arith.constant dense<0.000000e+00> : vector<128xf32>
    %14 = vector.multi_reduction <add>, %13, %cst_4 [0] : vector<16x128xf32> to vector<128xf32>
    %15 = vector.shape_cast %14 : vector<128xf32> to vector<1x128xf32>
    %cst_5 = arith.constant 1.17549435E-38 : f32
    %16 = vector.broadcast %cst_5 : f32 to vector<16x128xf32>
    %17 = arith.addf %13, %16 : vector<16x128xf32>
    %18 = math.log %17 : vector<16x128xf32>
    %19 = arith.mulf %13, %18 : vector<16x128xf32>
    %cst_6 = arith.constant dense<0.000000e+00> : vector<128xf32>
    %20 = vector.multi_reduction <add>, %19, %cst_6 [0] : vector<16x128xf32> to vector<128xf32>
    %21 = vector.shape_cast %20 : vector<128xf32> to vector<1x128xf32>
    %22 = tpu.reciprocal %15 {approx = true} : vector<1x128xf32> -> vector<1x128xf32>
    %23 = arith.mulf %15, %22 : vector<1x128xf32>
    %cst_7 = arith.constant 2.000000e+00 : f32
    %24 = vector.broadcast %cst_7 : f32 to vector<1x128xf32>
    %25 = arith.subf %24, %23 : vector<1x128xf32>
    %26 = arith.mulf %22, %25 : vector<1x128xf32>
    %27 = math.log %15 : vector<1x128xf32>
    %28 = arith.mulf %21, %26 : vector<1x128xf32>
    %29 = arith.subf %27, %28 : vector<1x128xf32>
    %c128_i32 = arith.constant 128 : i32
    %30 = arith.muli %arg0, %c128_i32 : i32
    %31 = tpu.iota {dimensions = array<i32: 1>} : vector<1x128xi32>
    %32 = vector.broadcast %30 : i32 to vector<1x128xi32>
    %33 = arith.addi %32, %31 : vector<1x128xi32>
    %c300_i32 = arith.constant 300 : i32
    %34 = vector.broadcast %c300_i32 : i32 to vector<1x128xi32>
    %35 = arith.cmpi slt, %33, %34 : vector<1x128xi32>
    %cst_8 = arith.constant 0.000000e+00 : f32
    %36 = vector.broadcast %cst_8 : f32 to vector<1x128xf32>
    %37 = arith.select %35, %29, %36 : vector<1x128xi1>, vector<1x128xf32>
    %c0_9 = arith.constant 0 : index
    %c0_10 = arith.constant 0 : index
    %38 = vector.load %arg3[%c0_9, %c0_10] : memref<1x128xf32, #tpu.memory_space<vmem>>, vector<1x128xf32>
    tpu.vector_store %arg3[%c0_9, %c0_10], %37 {strides = array<i32>} : memref<1x128xf32, #tpu.memory_space<vmem>>, vector<1x128xf32>,
    return
  }
  func.func @transform_0(%arg0: i32) -> (i32, i32) {
    %c0_i32 = arith.constant 0 : i32
    %c0_i32_0 = arith.constant 0 : i32
    return %c0_i32, %arg0 : i32, i32
  }
  func.func @transform_1(%arg0: i32) -> (i32, i32) {
    %c0_i32 = arith.constant 0 : i32
    %c0_i32_0 = arith.constant 0 : i32
    return %c0_i32, %arg0 : i32, i32
  }
  func.func @transform_2(%arg0: i32) -> (i32, i32) {
    %c0_i32 = arith.constant 0 : i32
    %c0_i32_0 = arith.constant 0 : i32
    return %c0_i32, %arg0 : i32, i32
  }
}

</mosaic_0001>

<bundles_post_ra>
// kernel: tpu_custom_call.1
= control target key start
LH: loop header
LB: loop body
LE: loop exit
PB: predicated region body
PF: predicated region fallthrough
CT: control target
= control target key end

     0   :  { %7 = vsyncpa [#allocation3], 0  ;;  %s832_s0 = inlined_call_operand.hbm [shape: f32[16,300], index: 0, kind: input, shape index: {}]   ;;  %s833_s1 = inlined_call_operand.hbm [shape: f32[16,300], index: 1, kind: input, shape index: {}]   ;;  %s834_s2 = inlined_call_operand.hbm [shape: f32[1,384], index: 2, kind: output, shape index: {}]  }
   0x1   :  { %9 = vsyncpa [#allocation3 + $0x1], 0 }
   0x2   :  { %10 = vsyncpa [#allocation6], 0 }
   0x3   :  { %12 = vsyncpa [#allocation6 + $0x1], 0 }
   0x4   :  { %13 = vsyncpa [#allocation4], 0 }
   0x5   :  { %15 = vsyncpa [#allocation4 + $0x1], 0  ;;  %s609_s9 = smov 0   ;;  %s611_s10 = smov 0  }
   0x6   :  { %s613_s11 = smov 0   ;;  %s615_s12 = smov 0  }
   0x7 LB: > { %s630_s13 = sadd.s32 4294967295, %s586_s12   ;;  %s372_s14 = sadd.s32 4294967294, %s586_s12   ;;  %s586_s12 = sphi %s615_s12, %s850_s12   ;;  %s582_s11 = sphi %s613_s11, %s849_s11   ;;  %s578_s10 = sphi %s611_s10, %s848_s10   ;;  %s574_s9 = sphi %s609_s9, %s847_s9  }
   0x8   : > { %s634_s15 = sadd.s32 1, %s586_s12   ;;  %s28_s16 = sadd.s32 1, %s582_s11 }
   0x9   : > { %s25_s17 = ssub.s32 %s586_s12, %s634_s15  ;;  %p35_p0 = scmp.ne.s32.totalorder %s582_s11, %s578_s10 }
   0xa   : > { %p26_p1 = scmp.eq.s32.totalorder %s25_s17, 0  ;;  %p36_p2 = scmp.eq.s32.totalorder %s586_s12, 0 }
   0xb   : > { %p41_p3 = scmp.ne.s32.totalorder %s578_s10, %s574_s9  ;;  %p42_p4 = scmp.eq.s32.totalorder %s630_s13, 0 }
   0xc   : > { %s646_s18 = scalar_select %p26_p1, %s582_s11, %s28_s16  }
   0xd   : > { %p648_p5 = por %p36_p2, %p35_p0  ;;  %p652_p6 = por %p42_p4, %p41_p3 }
   0xe   : > { %p91_p7 = scmp.eq.s32.totalorder %s630_s13, 2  ;;  %p97_p8 = scmp.eq.s32.totalorder %s372_s14, 2 }
   0xf   : > { %s838_s20 = scalar_select %p652_p6, 1, 0 }
  0x10   : > { %p403_p9 = scmp.lt.s32.totalorder %s586_s12, 3  ;;  %p658_p10 = por %p91_p7, %p35_p0 }
  0x11   : > { %p662_p11 = por %p97_p8, %p41_p3  ;;  %s667_s23 = sand.u32 1, %s582_s11  }
  0x12   : > { %s839_s21 = scalar_select %p658_p10, 1, 0 }
  0x13   : > { %s840_s22 = scalar_select %p662_p11, 1, 0 }
  0x14   : > { %s376_s24 = sshll.u32 %s586_s12, 7  ;;  %s375_s25 = sshll.u32 %s667_s23, 4 }
  0x15   : > { %s676_s28 = scalar_lea.hbm %s832_s0, %s376_s24  ;;  %s121_s29 = scalar_lea.vmem [#allocation2], %s375_s25 }
  0x16   : > { %s127_s30 = sshll.u32 %s121_s29, 4  ;;  %p682_p12 = pnand %p403_p9, %p648_p5  ;;  %s686_s30 = int_to_ptr.vmem [resolvable:$true] %s127_s30 }
  0x17   : > { %s118_s4 = scalar_lea.sflag [#allocation3], %s667_s23  ;;  %s456_s5 = scalar_lea.hbm %s676_s28, 256 }
  0x18   : > { %p457_p0 = scmp.ne.s32.totalorder %s676_s28, %s456_s5  ;;  %p458_p1 = pneg %p682_p12 }
  0x19   : > { %s461_s8 = scalar_lea.hbm %s832_s0, 768  ;;  %p462_p4 = scmp.lt.u32.totalorder %s676_s28, %s832_s0 }
  0x1a   : > { %p459_p2 = pnand %p458_p1, %p457_p0  ;;  %p463_p5 = scmp.lt.u32.totalorder %s461_s8, %s456_s5 }
  0x1b   : > { %p465_p8 = scmp.lt.u32.totalorder %s456_s5, %s676_s28 }
  0x1c   : > { %p460_p3 = pneg %p459_p2  ;;  %p464_p7 = por %p463_p5, %p462_p4 }
  0x1e   : > { %p466_p9 = por %p465_p8, %p464_p7 }
  0x20   : > { %p467_p13 = pnand %p466_p9, %p460_p3 }
  0x22   : > { %470 = shalt.err (!%p467_p13)
}
  0x23   : > { %s471_s17 = scalar_lea.vmem %s686_s30, 256  ;;  %s588_s19 = smov [#allocation2]  }
  0x24   : > { %p472_p0 = scmp.ne.s32.totalorder %s686_s30, %s471_s17  ;;  %s476_s26 = sshll.u32 %s588_s19, 4  ;;  %s477_s26 = int_to_ptr.vmem [resolvable:$false] %s476_s26 }
  0x25   : > { %s478_s27 = scalar_lea.vmem %s477_s26, 512  ;;  %p479_p10 = scmp.lt.s32.totalorder %s686_s30, %s477_s26 }
  0x26   : > { %p474_p2 = pnand %p472_p0, %p458_p1  ;;  %p480_p4 = scmp.lt.s32.totalorder %s478_s27, %s471_s17 }
  0x28   : > { %p475_p11 = pneg %p474_p2  ;;  %p481_p5 = por %p480_p4, %p479_p10 }
  0x2a   : > { %p482_p7 = pnand %p481_p5, %p475_p11 }
  0x2c   : > { %485 = shalt.err (!%p482_p7)
}
  0x2d   : > { %s589_s29 = smov 384   ;;  %s590_s5 = smov 128  }
  0x2e   : > { %s591_s6 = smov 8   ;;  %p155_p10 = scmp.lt.s32.totalorder %s586_s12, 4 }
  0x2f   : > { %395 = dma.hbm_to_vmem [thread:$0]  (!%p682_p12), %s676_s28, 256, %s686_s30, %s118_s4, %s589_s29, %s590_s5, %s591_s6  }
  0x30   : > { %s726_s14 = scalar_lea.hbm %s833_s1, %s376_s24  ;;  %p842_p11 = scmp.ge.s32.totalorder %s586_s12, 1 }
  0x31   : > { %s141_s17 = scalar_lea.vmem [#allocation5], %s375_s25  ;;  %s138_s28 = scalar_lea.sflag [#allocation6], %s667_s23 }
  0x32   : > { %p730_p13 = pnand %p842_p11, %p155_p10  ;;  %s147_s19 = sshll.u32 %s141_s17, 4  ;;  %s736_s19 = int_to_ptr.vmem [resolvable:$true] %s147_s19 }
  0x33   : > { %s486_s30 = scalar_lea.hbm %s726_s14, 256  ;;  %s491_s26 = scalar_lea.hbm %s833_s1, 768 }
  0x34   : > { %p487_p3 = scmp.ne.s32.totalorder %s726_s14, %s486_s30  ;;  %p492_p0 = scmp.lt.u32.totalorder %s726_s14, %s833_s1 }
  0x35   : > { %p493_p2 = scmp.lt.u32.totalorder %s491_s26, %s486_s30  ;;  %p495_p5 = scmp.lt.u32.totalorder %s486_s30, %s726_s14 }
  0x36   : > { %p489_p8 = pnand %p487_p3, %p458_p1 }
  0x37   : > { %p494_p4 = por %p493_p2, %p492_p0 }
  0x38   : > { %p490_p9 = pneg %p489_p8 }
  0x39   : > { %p496_p7 = por %p495_p5, %p494_p4 }
  0x3b   : > { %p497_p10 = pnand %p496_p7, %p490_p9 }
  0x3d   : > { %500 = shalt.err (!%p497_p10)
}
  0x3e   : > { %s501_s25 = scalar_lea.vmem %s736_s19, 256  ;;  %s592_s8 = smov [#allocation5]  }
  0x3f   : > { %p502_p11 = scmp.ne.s32.totalorder %s736_s19, %s501_s25  ;;  %s506_s17 = sshll.u32 %s592_s8, 4  ;;  %s507_s17 = int_to_ptr.vmem [resolvable:$false] %s506_s17 }
  0x40   : > { %s508_s24 = scalar_lea.vmem %s507_s17, 512  ;;  %p509_p6 = scmp.lt.s32.totalorder %s736_s19, %s507_s17 }
  0x41   : > { %p504_p3 = pnand %p502_p11, %p458_p1  ;;  %p510_p0 = scmp.lt.s32.totalorder %s508_s24, %s501_s25 }
  0x43   : > { %p505_p8 = pneg %p504_p3  ;;  %p511_p2 = por %p510_p0, %p509_p6 }
  0x45   : > { %p512_p4 = pnand %p511_p2, %p505_p8 }
  0x47   : > { %515 = shalt.err (!%p512_p4)
}
  0x48   : > { %398 = dma.hbm_to_vmem [thread:$0]  (!%p682_p12), %s726_s14, 256, %s736_s19, %s138_s28, %s589_s29, %s590_s5, %s591_s6  }
  0x49   : > { %159 = sbr.rel (%p730_p13) target bundleno = 171 (0xab), region = 28  ;;  %s770_s30 = sand.u32 (!%p730_p13), 1, %s578_s10  }
  0x4a   : > { %s380_s4 = sshll.u32 (!%p730_p13), %s770_s30, 4  ;;  %s162_s26 = scalar_lea.sflag (!%p730_p13), [#allocation3], %s770_s30 }
  0x4b   : > { %s165_s3 = scalar_lea.vmem (!%p730_p13), [#allocation2], %s380_s4  ;;  %p844_p6 = scmp.ne.s32.totalorder (!%p730_p13), %s838_s20, 0 }
  0x50   : > { %561 = dma.done.wait (%p844_p6), %s162_s26, 256  }
  0x51   : > { %563 = vsyncadd (%p844_p6), %s162_s26, 4294967040  ;;  %s171_s23 = scalar_lea.sflag [#allocation6], %s770_s30  ;;  %s174_s29 = scalar_lea.vmem [#allocation5], %s380_s4 }
  0x52   : > { %565 = dma.done.wait (%p844_p6), %s171_s23, 256  }
  0x53   : > { %567 = vsyncadd (%p844_p6), %s171_s23, 4294967040  ;;  %v199_v0 = vld [vmem:[%s165_s3] sm:$0xff]  ;;  %v200_v1 = vld [vmem:[%s165_s3 + $0x8] sm:$0xff]  ;;  %v263_v50 = vlaneseq  ;;  %s382_s20 = sshll.u32 %s630_s13, 7  ;;  %s198_s5 = scalar_lea.vmem [#allocation7], %s770_s30 }
  0x54   : > { %v201_v2 = vld [vmem:[%s174_s29] sm:$0xff]  ;;  %v202_v3 = vld [vmem:[%s174_s29 + $0x8] sm:$0xff]  ;;  %v203_v4 = vmax.f32 %v199_v0, %v200_v1  ;;  %v265_v57 = vstv %s382_s20  ;;  %s283_s6 = sshll.u32 %s198_s5, 4  ;;  %s383_s14 = sshll.u32 %s630_s13, 4  ;;  %s786_s6 = int_to_ptr.vmem [resolvable:$true] %s283_s6 }
  0x55   : > { %v210_v5 = vmax.f32 %v201_v2, %v202_v3  ;;  %v264_v54 = vand.u32 127, %v263_v50  ;;  %s791_s28 = scalar_lea.hbm %s834_s2, %s383_s14  ;;  %s271_s27 = scalar_lea.sflag [#allocation4], %s770_s30 }
  0x56   : > { %v204_v6 = vrot.slane %v203_v4, 4  ;;  %s516_s7 = scalar_lea.vmem %s786_s6, 16  ;;  %p845_p1 = scmp.ne.s32.totalorder %s839_s21, 0 }
  0x57   : > { %v211_v7 = vrot.slane %v210_v5, 4  ;;  %v266_v61 = vadd.s32 %v265_v57, %v264_v54  ;;  %p517_p12 = scmp.ne.s32.totalorder %s786_s6, %s516_s7  ;;  %s593_s13 = smov [#allocation7]  }
  0x58   : > { %v205_v8 = vmax.f32 %v203_v4, %v204_v6  ;;  %s520_s25 = sshll.u32 %s593_s13, 4  ;;  %s521_s25 = int_to_ptr.vmem [resolvable:$false] %s520_s25 }
  0x59   : > { %v212_v9 = vmax.f32 %v210_v5, %v211_v7  ;;  %vm267_vm0 = vcmp.lt.s32.totalorder %v266_v61, 300  ;;  %p518_p13 = pnand %p517_p12, %p845_p1  ;;  %s522_s8 = scalar_lea.vmem %s521_s25, 32 }
  0x5a   : > { %v206_v10 = vrot.slane %v205_v8, 2  ;;  %p523_p5 = scmp.lt.s32.totalorder %s786_s6, %s521_s25  ;;  %p524_p7 = scmp.lt.s32.totalorder %s522_s8, %s516_s7 }
  0x5b   : > { %v213_v11 = vrot.slane %v212_v9, 2  ;;  %p519_p9 = pneg %p518_p13 }
  0x5c   : > { %v207_v12 = vmax.f32 %v205_v8, %v206_v10  ;;  %p525_p10 = por %p524_p7, %p523_p5 }
  0x5d   : > { %v214_v13 = vmax.f32 %v212_v9, %v213_v11 }
  0x5e   : > { %v208_v14 = vrot.slane %v207_v12, 1  ;;  %p526_p11 = pnand %p525_p10, %p519_p9 }
  0x5f   : > { %v215_v15 = vrot.slane %v214_v13, 1 }
  0x60   : > { %v209_v16 = vmax.f32 %v207_v12, %v208_v14 }
  0x61   : > { %v216_v17 = vmax.f32 %v214_v13, %v215_v15 }
  0x63   : > { %v217_v18 = vmax.f32 %v209_v16, %v216_v17 }
  0x65   : > { %v218_v19 = vsub.f32 %v199_v0, %v217_v18  ;;  %v219_v20 = vsub.f32 %v200_v1, %v217_v18  ;;  %v224_v21 = vsub.f32 %v201_v2, %v217_v18  ;;  %v225_v22 = vsub.f32 %v202_v3, %v217_v18 }
  0x67   : > { %v220_v23 = vmul.f32 1.442695, %v218_v19  ;;  %v222_v24 = vmul.f32 1.442695, %v219_v20  ;;  %v226_v25 = vmul.f32 1.442695, %v224_v21 }
  0x68   : > { %v228_v26 = vmul.f32 1.442695, %v225_v22 }
  0x69   : > { %440 = vpow2.f32 %v220_v23 }
  0x6a   : > { %442 = vpow2.f32 %v222_v24 }
  0x6b   : > { %444 = vpow2.f32 %v226_v25 }
  0x6c   : > { %446 = vpow2.f32 %v228_v26 }
  0x73   : > { %v441_v27 = vpop.eup %440 }
  0x74   : > { %v443_v28 = vpop.eup %442 }
  0x75   : > { %v445_v29 = vpop.eup %444 }
  0x76   : > { %v447_v30 = vpop.eup %446  ;;  %v230_v31 = vadd.f32 %v445_v29, %v441_v27 }
  0x77   : > { %v231_v32 = vadd.f32 %v447_v30, %v443_v28 }
  0x78   : > { %v239_v33 = vadd.f32 1.1754944e-38, %v230_v31 }
  0x79   : > { %v232_v34 = vadd.f32 %v231_v32, %v230_v31  ;;  %v240_v35 = vadd.f32 1.1754944e-38, %v231_v32 }
  0x7a   : > { %448 = vlog2.f32 %v239_v33 }
  0x7b   : > { %v233_v36 = vrot.slane %v232_v34, 4  ;;  %450 = vlog2.f32 %v240_v35 }
  0x7d   : > { %v234_v37 = vadd.f32 %v233_v36, %v232_v34 }
  0x7f   : > { %v235_v38 = vrot.slane %v234_v37, 2 }
  0x81   : > { %v236_v39 = vadd.f32 %v235_v38, %v234_v37 }
  0x83   : > { %v237_v40 = vrot.slane %v236_v39, 1 }
  0x84   : > { %v449_v41 = vpop.eup %448 }
  0x85   : > { %v451_v42 = vpop.eup %450  ;;  %v238_v43 = vadd.f32 %v237_v40, %v236_v39  ;;  %v242_v44 = vmul.f32 0.6931472, %v449_v41 }
  0x86   : > { %v244_v45 = vmul.f32 0.6931472, %v451_v42 }
  0x87   : > { %v245_v46 = vmul.f32 %v242_v44, %v230_v31  ;;  %452 = vrcp.f32 %v238_v43 }
  0x88   : > { %v246_v47 = vmul.f32 %v244_v45, %v231_v32  ;;  %454 = vlog2.f32 %v238_v43 }
  0x8a   : > { %v247_v48 = vadd.f32 %v246_v47, %v245_v46 }
  0x8c   : > { %v248_v49 = vrot.slane %v247_v48, 4 }
  0x8e   : > { %v249_v51 = vadd.f32 %v248_v49, %v247_v48 }
  0x90   : > { %v250_v52 = vrot.slane %v249_v51, 2 }
  0x91   : > { %v453_v53 = vpop.eup %452 }
  0x92   : > { %v251_v55 = vadd.f32 %v250_v52, %v249_v51  ;;  %v255_v56 = vmul.f32 %v453_v53, %v238_v43  ;;  %v455_v58 = vpop.eup %454 }
  0x93   : > { %v259_v0 = vmul.f32 0.6931472, %v455_v58 }
  0x94   : > { %v252_v59 = vrot.slane %v251_v55, 1  ;;  %v256_v60 = vsub.f32 2.0, %v255_v56 }
  0x96   : > { %v253_v62 = vadd.f32 %v252_v59, %v251_v55  ;;  %v257_v63 = vmul.f32 %v453_v53, %v256_v60 }
  0x98   : > { %v260_v1 = vmul.f32 %v257_v63, %v253_v62 }
  0x9a   : > { %v261_v2 = vsub.f32 %v259_v0, %v260_v1 }
  0x9c   : > { %v268_v3 = vsel %vm267_vm0, %v261_v2, 0.0 }
  0x9d   : > { %269 = vst [vmem:[%s198_s5] sm:$0x1] %v268_v3 }
  0x9e   : > { %529 = shalt.err (!%p526_p11)
}
  0x9f   : > { %s530_s17 = scalar_lea.hbm %s791_s28, 16  ;;  %s534_s4 = scalar_lea.hbm %s834_s2, 48 }
  0xa0   : > { %p531_p3 = scmp.ne.s32.totalorder %s791_s28, %s530_s17  ;;  %p535_p2 = scmp.lt.u32.totalorder %s791_s28, %s834_s2 }
  0xa1   : > { %p536_p4 = scmp.lt.u32.totalorder %s534_s4, %s530_s17  ;;  %p538_p12 = scmp.lt.u32.totalorder %s530_s17, %s791_s28 }
  0xa2   : > { %p532_p8 = pnand %p531_p3, %p845_p1 }
  0xa3   : > { %p537_p6 = por %p536_p4, %p535_p2 }
  0xa4   : > { %p533_p0 = pneg %p532_p8 }
  0xa5   : > { %p539_p13 = por %p538_p12, %p537_p6 }
  0xa7   : > { %p540_p9 = pnand %p539_p13, %p533_p0 }
  0xa9   : > { %543 = shalt.err (!%p540_p9)
}
  0xaa   : > { %390 = dma.vmem_to_hbm [thread:$0]  (%p845_p1), %s786_s6, 16, %s791_s28, %s271_s27  }
  0xab PF: > { %p404_p5 = scmp.ge.s32.totalorder %s586_s12, 2  ;;  %s295_s23 = sand.u32 1, %s574_s9  }
  0xac   : > { %p846_p7 = scmp.ne.s32.totalorder %s840_s22, 0  ;;  %s296_s29 = scalar_lea.sflag [#allocation4], %s295_s23 }
  0xae   : > { %p400_p10 = pnand %p404_p5, %p846_p7 }
  0xb0   : > { %569 = dma.done.wait (!%p400_p10), %s296_s29, 16  }
  0xb1   : > { %571 = vsyncadd (!%p400_p10), %s296_s29, 4294967280  ;;  %p18_p11 = scmp.ge.s32.totalorder %s634_s15, 5   ;;  %s847_s9 = smov %s578_s10 }
  0xb2   : > { %s848_s10 = smov %s582_s11  ;;  %s849_s11 = smov %s646_s18 }
  0xb3   : > { %s850_s12 = smov %s634_s15  ;;  %20 = sbr.rel (!%p18_p11) target bundleno = 7 (0x7), region = 86 }
  0xba   :  { %300 = vsyncpa [#allocation3], 1 }
  0xbb   :  { %302 = vsyncpa [#allocation3 + $0x1], 1 }
  0xbc   :  { %303 = vsyncpa [#allocation6], 1 }
  0xbd   :  { %305 = vsyncpa [#allocation6 + $0x1], 1 }
  0xbe   :  { %306 = vsyncpa [#allocation4], 1 }
  0xbf   :  { %308 = vsyncpa [#allocation4 + $0x1], 1 }

</bundles_post_ra>
